<compile_context>
chip_gen: v6e
topology: v6e:2x2x1
jax: 0.10.0
libtpu: 0.0.40
codegen_flags: <defaults>
</compile_context>

<pallas_src>
import functools

import jax
import jax.numpy as jnp
from jax.experimental import pallas as pl
from jax.experimental.pallas import tpu as pltpu

EPSILON = 0.1          # label-smoothing epsilon, hard-coded in the PyTorch module
NEG_INF = -1e30        # padded-logit bias (finite: avoids inf-inf NaNs)


def _round_up(x, m):
    return (x + m - 1) // m * m


def _only_softmax_kernel(emb_ref, w_ref, b_ref, label_ref,
                         loss_ref, correct_ref, predict_ref, *, t_real):
    # emb_ref:   [TN, H]   bf16  (token-embedding tile)
    # w_ref:     [H, TP]   bf16  (classifier weight, TP = T padded to 128)
    # b_ref:     [1, TP]   f32   (bias; padded columns = NEG_INF)
    # label_ref: [TN, 1]   int32
    logits = jnp.dot(emb_ref[...], w_ref[...],
                     preferred_element_type=jnp.float32) + b_ref[...]      # [TN, TP]

    tn, tp = logits.shape
    col = jax.lax.broadcasted_iota(jnp.int32, (tn, tp), 1)
    label = label_ref[...]                                                  # [TN, 1]

    # argmax over logits (== argmax over logp); padded cols sit at NEG_INF so they
    # never win.  First-index tie-break (min over matching indices) matches torch.
    maxv = jnp.max(logits, axis=-1, keepdims=True)
    idx = jnp.where(logits >= maxv, col, tp)
    predict = jnp.min(idx, axis=-1, keepdims=True).astype(jnp.int32)        # [TN, 1]
    predict_ref[...] = predict

    # log-softmax pieces (padded columns contribute exp(~-1e30) = 0 to the lse)
    shifted = logits - maxv
    lse = jnp.log(jnp.sum(jnp.exp(shifted), axis=-1, keepdims=True))        # [TN, 1]

    # label-smoothed NLL without materializing one_hot / label_smooth [TN, TP]:
    #   numer = -((1-eps) * logp[label] + eps/T * sum_{t<T} logp[t])
    valid = col < t_real
    one_hot = col == label
    logp_at_label = (jnp.sum(jnp.where(one_hot, shifted, 0.0),
                             axis=-1, keepdims=True) - lse)
    sum_logp = (jnp.sum(jnp.where(valid, shifted, 0.0),
                        axis=-1, keepdims=True) - t_real * lse)
    numer = -((1.0 - EPSILON) * logp_at_label + (EPSILON / t_real) * sum_logp)

    label_mask = (label > 0).astype(jnp.float32)                            # [TN, 1]
    loss_ref[...] = jnp.sum(label_mask * numer).reshape(1, 1, 1)
    correct_ref[...] = jnp.sum(
        label_mask * (predict == label).astype(jnp.float32)).reshape(1, 1, 1)


def only_softmax_forward(src, label, emb_table, w, b,
                         padding_mask=None, batch_sequence_max_len=None,
                         *, tile_n=512):
    """Mirrors onlySoftmax.forward; returns (loss, correct, predict, label)."""
    if batch_sequence_max_len is None or batch_sequence_max_len <= 0:
        batch_sequence_max_len = src.shape[1]
    src = src[:, :batch_sequence_max_len]
    label = label[:, :batch_sequence_max_len]
    # padding_mask is unused by the reference forward (masking comes from label > 0)

    bs, seq = src.shape
    n = bs * seq
    h = emb_table.shape[1]
    t = w.shape[1]
    t_pad = _round_up(max(t, 128), 128)

    # Token tile: multiple of 16 sublanes (bf16 packing); padded rows carry label 0.
    tn = max(16, min(_round_up(tile_n, 16), _round_up(n, 16)))
    n_pad = _round_up(n, tn)
    num_tiles = n_pad // tn

    # WordEmbedding: token-embedding gather (glue), streamed into the kernel as bf16.
    # TODO(synk): fuse the gather into the kernel (scalar-prefetch / manual DMA from
    # an HBM-resident table) to avoid the HBM round-trip of the [N,H] activations;
    # full WordEmbedding (pos/seg emb + LayerNorm) is not defined in the reference
    # snippet -- only the token lookup is modeled.
    emb = jnp.take(emb_table, src.reshape(-1), axis=0).astype(jnp.bfloat16)  # [N, H]
    emb = jnp.pad(emb, ((0, n_pad - n), (0, 0)))
    # Dropout: identity in eval mode.

    # Padded rows get label 0 -> label_mask zeroes their loss/correct contribution.
    label_col = jnp.pad(label.reshape(-1).astype(jnp.int32),
                        (0, n_pad - n)).reshape(n_pad, 1)

    # Lane-dense classifier: zero-pad W columns, bias padding = NEG_INF.
    w_p = jnp.zeros((h, t_pad), jnp.bfloat16).at[:, :t].set(w.astype(jnp.bfloat16))
    b_p = jnp.full((1, t_pad), NEG_INF, jnp.float32).at[0, :t].set(
        b.astype(jnp.float32))

    kernel = functools.partial(_only_softmax_kernel, t_real=t)

    out_shapes = (
        jax.ShapeDtypeStruct((num_tiles, 1, 1), jnp.float32),   # per-tile loss
        jax.ShapeDtypeStruct((num_tiles, 1, 1), jnp.float32),   # per-tile correct
        jax.ShapeDtypeStruct((n_pad, 1), jnp.int32),            # predict column
    )

    loss_p, correct_p, predict = pl.pallas_call(
        kernel,
        out_shape=out_shapes,
        grid=(num_tiles,),
        in_specs=[
            pl.BlockSpec((tn, h), lambda i: (i, 0)),         # emb tile (pipelined)
            pl.BlockSpec((h, t_pad), lambda i: (0, 0)),      # W (resident)
            pl.BlockSpec((1, t_pad), lambda i: (0, 0)),      # bias (resident)
            pl.BlockSpec((tn, 1), lambda i: (i, 0)),         # labels tile
        ],
        out_specs=[
            pl.BlockSpec((1, 1, 1), lambda i: (i, 0, 0)),    # loss partial
            pl.BlockSpec((1, 1, 1), lambda i: (i, 0, 0)),    # correct partial
            pl.BlockSpec((tn, 1), lambda i: (i, 0)),         # predict tile
        ],
        compiler_params=pltpu.CompilerParams(
            dimension_semantics=("parallel",)),
    )(emb, w_p, b_p, label_col)

    loss = jnp.sum(loss_p)
    correct = jnp.sum(correct_p)
    return loss, correct, predict[:n, 0], label.reshape(-1)


def _reference(src, label, emb_table, w, b):
    """Pure-JAX reference (matches the kernel's bf16 streaming of emb/W; the math
    itself follows the PyTorch module exactly)."""
    n = src.shape[0] * src.shape[1]
    emb = jnp.take(emb_table, src.reshape(-1), axis=0).astype(jnp.bfloat16)
    logits = jnp.dot(emb, w.astype(jnp.bfloat16),
                     preferred_element_type=jnp.float32) + b
    logp = jax.nn.log_softmax(logits, axis=-1)
    t = logits.shape[-1]
    lab = label.reshape(n)
    one_hot = jax.nn.one_hot(lab, t, dtype=jnp.float32)
    smooth = (1.0 - EPSILON) * one_hot + EPSILON / t
    numer = -jnp.sum(logp * smooth, axis=-1)
    mask = (lab > 0).astype(jnp.float32)
    loss = jnp.sum(mask * numer)
    predict = jnp.argmax(logp, axis=-1).astype(jnp.int32)
    correct = jnp.sum(mask * (predict == lab).astype(jnp.float32))
    return loss, correct, predict, lab


if __name__ == "__main__":
    # Small deterministic config implied by the forward:
    batch, seq = 4, 16       # 64 tokens -> 2 tiles of 32 in the demo
    vocab_size = 50
    hidden_size = 32         # args.hidden_size
    tagset_size = 7          # len(args.labels_map)

    key = jax.random.PRNGKey(0)
    k_emb, k_w, k_src, k_lab = jax.random.split(key, 4)

    emb_table = jax.random.normal(k_emb, (vocab_size, hidden_size), jnp.float32) * 0.5
    w = jax.random.normal(k_w, (hidden_size, tagset_size), jnp.float32) * 0.5
    b = jnp.zeros((tagset_size,), jnp.float32)

    src = jax.random.randint(k_src, (batch, seq), 0, vocab_size, dtype=jnp.int32)
    label = jax.random.randint(k_lab, (batch, seq), 0, tagset_size, dtype=jnp.int32)

    loss, correct, predict, label_out = only_softmax_forward(
        src, label, emb_table, w, b, tile_n=32)
    jax.block_until_ready((loss, correct, predict, label_out))

    # sanity check vs pure-JAX reference
    r_loss, r_correct, r_predict, r_label = _reference(src, label, emb_table, w, b)
    assert jnp.allclose(loss, r_loss, atol=1e-3, rtol=1e-3), (loss, r_loss)
    assert jnp.allclose(correct, r_correct), (correct, r_correct)
    assert jnp.array_equal(predict, r_predict), (predict, r_predict)
    assert jnp.array_equal(label_out, r_label)

    print("KERNEL_OK")
</pallas_src>

<mosaic_0001>
module attributes {stable_mosaic.version = 11 : i64} {
  func.func @_only_softmax_kernel(%arg0: i32, %arg1: memref<32x32xbf16, #tpu.memory_space<vmem>>, %arg2: memref<32x128xbf16, #tpu.memory_space<vmem>>, %arg3: memref<1x128xf32, #tpu.memory_space<vmem>>, %arg4: memref<32x1xi32, #tpu.memory_space<vmem>>, %arg5: memref<1x1x1xf32, #tpu.memory_space<vmem>>, %arg6: memref<1x1x1xf32, #tpu.memory_space<vmem>>, %arg7: memref<32x1xi32, #tpu.memory_space<vmem>>) attributes {dimension_semantics = [#tpu.dimension_semantics<parallel>], iteration_bounds = array<i64: 2>, scalar_prefetch = 0 : i64, scratch_operands = 0 : i64, tpu.core_type = #tpu.core_type<tc>, window_params = [{transform_indices = @transform_0, window_bounds = array<i64: 32, 32>}, {pipeline_mode = #tpu.pipeline_mode<synchronous>, transform_indices = @transform_1, window_bounds = array<i64: 32, 128>}, {pipeline_mode = #tpu.pipeline_mode<synchronous>, transform_indices = @transform_2, window_bounds = array<i64: 1, 128>}, {transform_indices = @transform_3, window_bounds = array<i64: 32, 1>}, {transform_indices = @transform_4, window_bounds = array<i64: 1, 1, 1>}, {transform_indices = @transform_5, window_bounds = array<i64: 1, 1, 1>}, {transform_indices = @transform_6, window_bounds = array<i64: 32, 1>}]} {
    %c0 = arith.constant 0 : index
    %c0_0 = arith.constant 0 : index
    %0 = vector.load %arg1[%c0, %c0_0] : memref<32x32xbf16, #tpu.memory_space<vmem>>, vector<32x32xbf16>
    %c0_1 = arith.constant 0 : index
    %c0_2 = arith.constant 0 : index
    %1 = vector.load %arg2[%c0_1, %c0_2] : memref<32x128xbf16, #tpu.memory_space<vmem>>, vector<32x128xbf16>
    %cst = arith.constant dense<0.000000e+00> : vector<32x128xf32>
    %2 = tpu.matmul %0, %1, %cst {dimension_numbers = #tpu.dot_dimension_numbers<[1], [0], [0], [1], [0, 0, 1, 1], [], []>} : vector<32x32xbf16>, vector<32x128xbf16>, vector<32x128xf32> -> vector<32x128xf32>
    %c0_3 = arith.constant 0 : index
    %c0_4 = arith.constant 0 : index
    %3 = vector.load %arg3[%c0_3, %c0_4] : memref<1x128xf32, #tpu.memory_space<vmem>>, vector<1x128xf32>
    %4 = vector.broadcast %3 : vector<1x128xf32> to vector<32x128xf32>
    %5 = arith.addf %2, %4 : vector<32x128xf32>
    %6 = tpu.iota {dimensions = array<i32: 1>} : vector<32x128xi32>
    %c0_5 = arith.constant 0 : index
    %c0_6 = arith.constant 0 : index
    %7 = vector.load %arg4[%c0_5, %c0_6] : memref<32x1xi32, #tpu.memory_space<vmem>>, vector<32x1xi32>
    %cst_7 = arith.constant dense<0xFF800000> : vector<32xf32>
    %8 = vector.multi_reduction <maximumf>, %5, %cst_7 [1] : vector<32x128xf32> to vector<32xf32>
    %9 = vector.shape_cast %8 : vector<32xf32> to vector<32x1xf32>
    %10 = vector.broadcast %9 : vector<32x1xf32> to vector<32x128xf32>
    %11 = arith.cmpf oge, %5, %10 : vector<32x128xf32>
    %c128_i32 = arith.constant 128 : i32
    %12 = vector.broadcast %c128_i32 : i32 to vector<32x128xi32>
    %13 = arith.select %11, %6, %12 : vector<32x128xi1>, vector<32x128xi32>
    %cst_8 = arith.constant dense<2147483647> : vector<32xi32>
    %14 = vector.multi_reduction <minsi>, %13, %cst_8 [1] : vector<32x128xi32> to vector<32xi32>
    %15 = vector.shape_cast %14 : vector<32xi32> to vector<32x1xi32>
    %c0_9 = arith.constant 0 : index
    %c0_10 = arith.constant 0 : index
    %16 = vector.load %arg7[%c0_9, %c0_10] : memref<32x1xi32, #tpu.memory_space<vmem>>, vector<32x1xi32>
    tpu.vector_store %arg7[%c0_9, %c0_10], %15 {strides = array<i32>} : memref<32x1xi32, #tpu.memory_space<vmem>>, vector<32x1xi32>,
    %17 = vector.broadcast %9 : vector<32x1xf32> to vector<32x128xf32>
    %18 = arith.subf %5, %17 : vector<32x128xf32>
    %19 = math.exp %18 : vector<32x128xf32>
    %cst_11 = arith.constant dense<0.000000e+00> : vector<32xf32>
    %20 = vector.multi_reduction <add>, %19, %cst_11 [1] : vector<32x128xf32> to vector<32xf32>
    %21 = vector.shape_cast %20 : vector<32xf32> to vector<32x1xf32>
    %22 = math.log %21 : vector<32x1xf32>
    %c7_i32 = arith.constant 7 : i32
    %23 = vector.broadcast %c7_i32 : i32 to vector<32x128xi32>
    %24 = arith.cmpi slt, %6, %23 : vector<32x128xi32>
    %25 = vector.broadcast %7 : vector<32x1xi32> to vector<32x128xi32>
    %26 = arith.cmpi eq, %6, %25 : vector<32x128xi32>
    %cst_12 = arith.constant 0.000000e+00 : f32
    %27 = vector.broadcast %cst_12 : f32 to vector<32x128xf32>
    %28 = arith.select %26, %18, %27 : vector<32x128xi1>, vector<32x128xf32>
    %cst_13 = arith.constant dense<0.000000e+00> : vector<32xf32>
    %29 = vector.multi_reduction <add>, %28, %cst_13 [1] : vector<32x128xf32> to vector<32xf32>
    %30 = vector.shape_cast %29 : vector<32xf32> to vector<32x1xf32>
    %31 = arith.subf %30, %22 : vector<32x1xf32>
    %cst_14 = arith.constant 0.000000e+00 : f32
    %32 = vector.broadcast %cst_14 : f32 to vector<32x128xf32>
    %33 = arith.select %24, %18, %32 : vector<32x128xi1>, vector<32x128xf32>
    %cst_15 = arith.constant dense<0.000000e+00> : vector<32xf32>
    %34 = vector.multi_reduction <add>, %33, %cst_15 [1] : vector<32x128xf32> to vector<32xf32>
    %35 = vector.shape_cast %34 : vector<32xf32> to vector<32x1xf32>
    %cst_16 = arith.constant 7.000000e+00 : f32
    %36 = vector.broadcast %cst_16 : f32 to vector<32x1xf32>
    %37 = arith.mulf %36, %22 : vector<32x1xf32>
    %38 = arith.subf %35, %37 : vector<32x1xf32>
    %cst_17 = arith.constant 0.899999976 : f32
    %39 = vector.broadcast %cst_17 : f32 to vector<32x1xf32>
    %40 = arith.mulf %39, %31 : vector<32x1xf32>
    %cst_18 = arith.constant 0.0142857144 : f32
    %41 = vector.broadcast %cst_18 : f32 to vector<32x1xf32>
    %42 = arith.mulf %41, %38 : vector<32x1xf32>
    %43 = arith.addf %40, %42 : vector<32x1xf32>
    %cst_19 = arith.constant 0.000000e+00 : f32
    %44 = vector.broadcast %cst_19 : f32 to vector<32x1xf32>
    %45 = arith.subf %44, %43 : vector<32x1xf32>
    %c0_i32 = arith.constant 0 : i32
    %46 = vector.broadcast %c0_i32 : i32 to vector<32x1xi32>
    %47 = arith.cmpi sgt, %7, %46 : vector<32x1xi32>
    %48 = arith.extui %47 : vector<32x1xi1> to vector<32x1xi32>
    %49 = arith.sitofp %48 : vector<32x1xi32> to vector<32x1xf32>
    %50 = arith.mulf %49, %45 : vector<32x1xf32>
    %51 = vector.shape_cast %50 : vector<32x1xf32> to vector<1x32x1xf32>
    %cst_20 = arith.constant dense<0.000000e+00> : vector<1xf32>
    %52 = vector.multi_reduction <add>, %51, %cst_20 [1, 2] : vector<1x32x1xf32> to vector<1xf32>
    %53 = vector.shape_cast %52 : vector<1xf32> to vector<1x1x1xf32>
    %54 = vector.extract %53[0, 0, 0] : f32 from vector<1x1x1xf32>
    %55 = vector.broadcast %54 : f32 to vector<1x1x1xf32>
    %c0_21 = arith.constant 0 : index
    %c0_22 = arith.constant 0 : index
    %c0_23 = arith.constant 0 : index
    %56 = vector.load %arg5[%c0_21, %c0_22, %c0_23] : memref<1x1x1xf32, #tpu.memory_space<vmem>>, vector<1x1x1xf32>
    tpu.vector_store %arg5[%c0_21, %c0_22, %c0_23], %55 {strides = array<i32>} : memref<1x1x1xf32, #tpu.memory_space<vmem>>, vector<1x1x1xf32>,
    %57 = arith.cmpi eq, %15, %7 : vector<32x1xi32>
    %58 = arith.extui %57 : vector<32x1xi1> to vector<32x1xi32>
    %59 = arith.sitofp %58 : vector<32x1xi32> to vector<32x1xf32>
    %60 = arith.mulf %49, %59 : vector<32x1xf32>
    %61 = vector.shape_cast %60 : vector<32x1xf32> to vector<1x32x1xf32>
    %cst_24 = arith.constant dense<0.000000e+00> : vector<1xf32>
    %62 = vector.multi_reduction <add>, %61, %cst_24 [1, 2] : vector<1x32x1xf32> to vector<1xf32>
    %63 = vector.shape_cast %62 : vector<1xf32> to vector<1x1x1xf32>
    %64 = vector.extract %63[0, 0, 0] : f32 from vector<1x1x1xf32>
    %65 = vector.broadcast %64 : f32 to vector<1x1x1xf32>
    %c0_25 = arith.constant 0 : index
    %c0_26 = arith.constant 0 : index
    %c0_27 = arith.constant 0 : index
    %66 = vector.load %arg6[%c0_25, %c0_26, %c0_27] : memref<1x1x1xf32, #tpu.memory_space<vmem>>, vector<1x1x1xf32>
    tpu.vector_store %arg6[%c0_25, %c0_26, %c0_27], %65 {strides = array<i32>} : memref<1x1x1xf32, #tpu.memory_space<vmem>>, vector<1x1x1xf32>,
    return
  }
  func.func @transform_0(%arg0: i32) -> (i32, i32) {
    %c0_i32 = arith.constant 0 : i32
    %c0_i32_0 = arith.constant 0 : i32
    return %arg0, %c0_i32 : i32, i32
  }
  func.func @transform_1(%arg0: i32) -> (i32, i32) {
    %c0_i32 = arith.constant 0 : i32
    %c0_i32_0 = arith.constant 0 : i32
    %c0_i32_1 = arith.constant 0 : i32
    return %c0_i32, %c0_i32_0 : i32, i32
  }
  func.func @transform_2(%arg0: i32) -> (i32, i32) {
    %c0_i32 = arith.constant 0 : i32
    %c0_i32_0 = arith.constant 0 : i32
    %c0_i32_1 = arith.constant 0 : i32
    return %c0_i32, %c0_i32_0 : i32, i32
  }
  func.func @transform_3(%arg0: i32) -> (i32, i32) {
    %c0_i32 = arith.constant 0 : i32
    %c0_i32_0 = arith.constant 0 : i32
    return %arg0, %c0_i32 : i32, i32
  }
  func.func @transform_4(%arg0: i32) -> (i32, i32, i32) {
    %c0_i32 = arith.constant 0 : i32
    %c0_i32_0 = arith.constant 0 : i32
    %c0_i32_1 = arith.constant 0 : i32
    return %arg0, %c0_i32, %c0_i32_0 : i32, i32, i32
  }
  func.func @transform_5(%arg0: i32) -> (i32, i32, i32) {
    %c0_i32 = arith.constant 0 : i32
    %c0_i32_0 = arith.constant 0 : i32
    %c0_i32_1 = arith.constant 0 : i32
    return %arg0, %c0_i32, %c0_i32_0 : i32, i32, i32
  }
  func.func @transform_6(%arg0: i32) -> (i32, i32) {
    %c0_i32 = arith.constant 0 : i32
    %c0_i32_0 = arith.constant 0 : i32
    return %arg0, %c0_i32 : i32, i32
  }
}

</mosaic_0001>

<bundles_post_ra>
// kernel: tpu_custom_call.1
= control target key start
LH: loop header
LB: loop body
LE: loop exit
PB: predicated region body
PF: predicated region fallthrough
CT: control target
= control target key end

     0   :  { %s876_s21 = smov 0   ;;  %s1020_s0 = inlined_call_operand.vmem [shape: bf16[64,32], index: 0, kind: input, shape index: {}]   ;;  %s1021_s1 = inlined_call_operand.vmem [shape: bf16[32,128], index: 1, kind: input, shape index: {}]   ;;  %s1022_s2 = inlined_call_operand.vmem [shape: f32[1,128], index: 2, kind: input, shape index: {}]   ;;  %s1023_s3 = inlined_call_operand.vmem [shape: s32[64,1], index: 3, kind: input, shape index: {}]   ;;  %s1024_s4 = inlined_call_operand.vmem [shape: f32[2,1,1], index: 4, kind: output, shape index: {0}]   ;;  %s1025_s5 = inlined_call_operand.vmem [shape: f32[2,1,1], index: 5, kind: output, shape index: {1}]   ;;  %s1026_s6 = inlined_call_operand.vmem [shape: s32[64,1], index: 6, kind: output, shape index: {2}]  }
   0x1 LB: > { %s882_s22 = sadd.s32 4294967295, %s837_s21   ;;  %p759_p0 = scmp.ge.s32.totalorder %s837_s21, 1  ;;  %s837_s21 = sphi %s876_s21, %s17_s21  }
   0x2   : > { %p229_p1 = scmp.lt.s32.totalorder %s837_s21, 3 }
   0x4   : > { %p230_p2 = pnand %p759_p0, %p229_p1 }
   0x5   : > { %s760_s25 = sshll.u32 (!%p230_p2), %s882_s22, 2  ;;  %p282_p4 = scmp.lt.s32.totalorder (!%p230_p2), %s882_s22, 1 }
   0x6   : > { %233 = sbr.rel (%p230_p2) target bundleno = 886 (0x376), region = 36  ;;  %p271_p3 = scmp.lt.s32.totalorder (!%p230_p2), %s760_s25, 7 }
   0xb   : > { %v811_v0 = vld [vmem:[%s1021_s1 + $0x8] sm:$0xff]   ;;  %v812_v1 = vld [vmem:[%s1021_s1] sm:$0xff]   ;;  %s1028_s25 = smov (!%p271_p3, %s760_s25), 7  ;;  %vm332_vm0 = vcmask 261120   ;;  %v839_v4 = vmov 0   ;;  %v388_v16 = vlaneseq  ;;  %vm466_vm14 = vcmask 7168  }
   0xc   : > { %787 = vmatprep.subr.bf16.mxu0 %v811_v0  ;;  %s761_s28 = sshll.u32 %s1028_s25, 2  ;;  %810 = vset.pattern.permute.xlu1 %v839_v4  ;;  %v766_v5 = vld [vmem:[%s1022_s2] ss:$0 sm:$0xff]  ;;  %s763_s10 = sshll.u32 %s1028_s25, 3 }
   0xd   : > { %788 = vmatpush3.bf16.msra.mxu0 %v811_v0  ;;  %s274_s7 = scalar_lea.vmem %s1020_s0, %s761_s28  ;;  %809 = vset.pattern.permute.xlu0 %v839_v4  ;;  %s908_s13 = scalar_lea.vmem %s1023_s3, %s763_s10  ;;  %v918_v17 = vand.u32 127, %v388_v16 }
   0xe   : > { %789 = vmatprep.subr.bf16.mxu0 %v812_v1  ;;  %v813_v2 = vld [vmem:[%s274_s7] sm:$0xff]   ;;  %v814_v3 = vld [vmem:[%s274_s7 + $0x8] sm:$0xff]   ;;  %v915_v15 = vld [vmem:[%s908_s13 + $0x10] sm:$0xff]  ;;  %s974_s16 = scalar_lea.vmem %s1026_s6, %s763_s10  ;;  %s1030_s22 = smov (!%p282_p4, %s882_s22), 1 }
   0xf   : > { %791 = vmatprep.mubr.msk.bf16.mxu0 %vm332_vm0, %v813_v2  ;;  %v911_v14 = vld [vmem:[%s908_s13 + $0x8] sm:$0xff]  ;;  %vm499_vm2 = vcmp.lt.s32.totalorder %v918_v17, 7  ;;  %v942_v40 = vld [vmem:[%s908_s13 + $0x18] sm:$0xff]  ;;  %v945_v41 = vld [vmem:[%s908_s13] sm:$0xff]  ;;  %s284_s19 = scalar_lea.vmem %s1024_s4, %s1030_s22  ;;  %s287_s25 = scalar_lea.vmem %s1025_s5, %s1030_s22 }
  0x10   : > { %vm569_vm15 = vcmp.gt.s32.totalorder %v911_v14, 0 }
  0x11   : > { %790 = vmatpush3.bf16.msra.mxu0 %v812_v1 }
  0x14   : > { %792 = vmatmul.mubr.msk.bf16.vlgmr.msra.gmra.mxu0 %vm332_vm0, %v814_v3  ;;  %vm568_vm0 = vcmp.gt.s32.totalorder %v945_v41, 0 }
  0xd4   : > { %v793_v6 = vpop.f32.mrf.mxu0 }
  0xd5   : > { %v382_v7 = vadd.f32 %v793_v6, %v766_v5 }
  0xd6   : > { %v373_v8 = vpop.f32.mrf.mxu0 }
  0xd7   : > { %v374_v9 = vadd.f32 %v766_v5, %v373_v8  ;;  %398 = vmax.xlane.f32.xlu1 %v382_v7 }
  0xd8   : > { %v794_v10 = vpop.f32.mrf.mxu0 }
  0xd9   : > { %v385_v11 = vadd.f32 %v794_v10, %v766_v5  ;;  %394 = vmax.xlane.f32.xlu0 %v374_v9 }
  0xda   : > { %v376_v12 = vpop.f32.mrf.mxu0 }
  0xdb   : > { %v377_v13 = vadd.f32 %v766_v5, %v376_v12  ;;  %400 = vmax.xlane.f32.xlu1 %v385_v11 }
  0xdd   : > { %396 = vmax.xlane.f32.xlu0 %v377_v13 }
  0xec   : > { %504 = vperm.xlu1 %810, %v911_v14  }
  0xf0   : > { %507 = vperm.xlu1 %810, %v915_v15  }
 0x160   : > { %v399_v18 = vpop.xlane.xlu1 %398 }
 0x161   : > { %vm404_vm1 = vcmp.ge.f32.partialorder %v382_v7, %v399_v18  ;;  %v473_v19 = vsub.f32 %v382_v7, %v399_v18 }
 0x162   : > { %v408_v20 = vsel %vm404_vm1, %v918_v17, 128  ;;  %v395_v21 = vpop.xlane.xlu0 %394  ;;  %vm570_vm1 = vcmp.gt.s32.totalorder %v915_v15, 0 }
 0x163   : > { %vm402_vm3 = vcmp.ge.f32.partialorder %v374_v9, %v395_v21  ;;  %v439_v22 = vshra.s32 %v408_v20, 16  ;;  %v925_v25 = vsel %vm499_vm2, %v473_v19, 0.0  ;;  %v471_v42 = vsub.f32 %v374_v9, %v395_v21 }
 0x164   : > { %v406_v23 = vsel %vm402_vm3, %v918_v17, 128  ;;  %v401_v24 = vpop.xlane.xlu1 %400  ;;  %v479_v45 = vmul.f32 1.442695, %v473_v19  ;;  %v438_v55 = vand.u32 65535, %v408_v20 }
 0x165   : > { %vm405_vm4 = vcmp.ge.f32.partialorder %v385_v11, %v401_v24  ;;  %v441_v28 = vcvt.s32.f32 %v439_v22  ;;  %v411_v29 = vshra.s32 %v406_v23, 16  ;;  %v475_v44 = vmul.f32 1.442695, %v471_v42 }
 0x166   : > { %v928_v26 = vsel %vm405_vm4, %v918_v17, 128  ;;  %v397_v27 = vpop.xlane.xlu0 %396  ;;  %v474_v46 = vsub.f32 %v385_v11, %v401_v24  ;;  %v532_v51 = vsel %vm499_vm2, %v471_v42, 0.0  ;;  %v440_v57 = vcvt.s32.f32 %v438_v55 }
 0x167   : > { %vm403_vm5 = vcmp.ge.f32.partialorder %v377_v13, %v397_v27  ;;  %v472_v30 = vsub.f32 %v377_v13, %v397_v27  ;;  %442 = vmin.xlane.f32.xlu0 %v441_v28  ;;  %v453_v33 = vshra.s32 %v928_v26, 16  ;;  %v413_v35 = vcvt.s32.f32 %v411_v29 }
 0x168   : > { %v931_v31 = vsel %vm403_vm5, %v918_v17, 128  ;;  %v505_v32 = vpop.permute.xlu1 %504  ;;  %v481_v47 = vmul.f32 1.442695, %v474_v46  ;;  %v410_v58 = vand.u32 65535, %v406_v23  ;;  %v535_v63 = vsel %vm499_vm2, %v474_v46, 0.0 }
 0x169   : > { %vm513_vm6 = vcmp.eq.s32.totalorder %v918_v17, %v505_v32  ;;  %v935_v34 = vcvt.s32.f32 %v453_v33  ;;  %v425_v36 = vshra.s32 %v931_v31, 16  ;;  %v533_v38 = vsel %vm499_vm2, %v472_v30, 0.0 }
 0x16a   : > { %v517_v37 = vsel %vm513_vm6, %v472_v30, 0.0  ;;  %v477_v43 = vmul.f32 1.442695, %v472_v30  ;;  %v412_v61 = vcvt.s32.f32 %v410_v58  ;;  %v424_v5 = vand.u32 65535, %v931_v31 }
 0x16b   : > { %456 = vmin.xlane.f32.xlu1 %v935_v34  ;;  %414 = vmin.xlane.f32.xlu0 %v413_v35  ;;  %v427_v39 = vcvt.s32.f32 %v425_v36  ;;  %v452_v8 = vand.u32 65535, %v928_v26  ;;  %vm571_vm2 = vcmp.gt.s32.totalorder %v942_v40, 0 }
 0x16c   : > { %815 = vpow2.f32 %v477_v43  ;;  %v508_v49 = vpop.permute.xlu1 %507  ;;  %v426_v7 = vcvt.s32.f32 %v424_v5 }
 0x16d   : > { %817 = vpow2.f32 %v475_v44  ;;  %vm514_vm7 = vcmp.eq.s32.totalorder %v918_v17, %v508_v49  ;;  %v454_v10 = vcvt.s32.f32 %v452_v8 }
 0x16e   : > { %819 = vpow2.f32 %v479_v45  ;;  %v518_v53 = vsel %vm514_vm7, %v473_v19, 0.0  ;;  %vm601_vm7 = vcmask 0  }
 0x16f   : > { %428 = vmin.xlane.f32.xlu1 %v427_v39  ;;  %821 = vpow2.f32 %v481_v47 }
 0x179   : > { %v816_v48 = vpop.eup %815 }
 0x17a   : > { %v818_v50 = vpop.eup %817 }
 0x17b   : > { %v820_v52 = vpop.eup %819 }
 0x17c   : > { %v822_v54 = vpop.eup %821 }
 0x180   : > { %510 = vperm.xlu1 %810, %v942_v40  }
 0x181   : > { %501 = vperm.xlu0 %809, %v945_v41  }
 0x1a0   : > { %485 = vadd.xlane.f32.xlu0 %v816_v48 }
 0x1a4   : > { %536 = vadd.xlane.f32.xlu0 %v532_v51  ;;  %483 = vadd.xlane.f32.xlu1 %v818_v50 }
 0x1a8   : > { %524 = vadd.xlane.f32.xlu0 %v518_v53  ;;  %487 = vadd.xlane.f32.xlu1 %v820_v52 }
 0x1ac   : > { %489 = vadd.xlane.f32.xlu1 %v822_v54 }
 0x1f0   : > { %v952_v56 = vpop.xlane.xlu0 %442 }
 0x1f1   : > { %vm444_vm8 = vcmp.eq.f32.partialorder %v441_v28, %v952_v56  ;;  %v449_v47 = vcvt.f32.s32 %v952_v56 }
 0x1f2   : > { %v445_v59 = vsel %vm444_vm8, %v440_v57, inf }
 0x1f3   : > { %446 = vmin.xlane.f32.xlu0 %v445_v59 }
 0x1f4   : > { %v415_v60 = vpop.xlane.xlu0 %414  ;;  %v957_v0 = vpop.xlane.xlu1 %456 }
 0x1f5   : > { %vm416_vm9 = vcmp.eq.f32.partialorder %v413_v35, %v415_v60  ;;  %vm458_vm13 = vcmp.eq.f32.partialorder %v935_v34, %v957_v0  ;;  %v421_v20 = vcvt.f32.s32 %v415_v60  ;;  %v840_v60 = vmov 0.0  }
 0x1f6   : > { %v417_v62 = vsel %vm416_vm9, %v412_v61, inf  ;;  %v459_v11 = vsel %vm458_vm13, %v454_v10, inf  ;;  %v774_v61 = vsel %vm569_vm15, 1.0, %v840_v60 }
 0x1f7   : > { %418 = vmin.xlane.f32.xlu0 %v417_v62  ;;  %v422_v23 = vshll.u32 %v421_v20, 16  ;;  %v450_v62 = vshll.u32 %v449_v47, 16 }
 0x1f8   : > { %v960_v3 = vpop.xlane.xlu1 %428 }
 0x1f9   : > { %vm430_vm12 = vcmp.eq.f32.partialorder %v427_v39, %v960_v3  ;;  %v435_v5 = vcvt.f32.s32 %v960_v3  ;;  %v463_v3 = vcvt.f32.s32 %v957_v0 }
 0x1fa   : > { %v431_v9 = vsel %vm430_vm12, %v426_v7, inf }
 0x1fb   : > { %542 = vadd.xlane.f32.xlu0 %v535_v63 }
 0x1fc   : > { %v502_v1 = vpop.permute.xlu0 %501  ;;  %v511_v4 = vpop.permute.xlu1 %510 }
 0x1fd   : > { %vm512_vm10 = vcmp.eq.s32.totalorder %v918_v17, %v502_v1  ;;  %vm515_vm11 = vcmp.eq.s32.totalorder %v918_v17, %v511_v4 }
 0x1fe   : > { %v516_v2 = vsel %vm512_vm10, %v471_v42, 0.0  ;;  %v519_v6 = vsel %vm515_vm11, %v474_v46, 0.0 }
 0x1ff   : > { %520 = vadd.xlane.f32.xlu1 %v516_v2 }
 0x203   : > { %522 = vadd.xlane.f32.xlu1 %v517_v37 }
 0x207   : > { %538 = vadd.xlane.f32.xlu1 %v533_v38 }
 0x20b   : > { %540 = vadd.xlane.f32.xlu1 %v925_v25 }
 0x20f   : > { %526 = vadd.xlane.f32.xlu1 %v519_v6 }
 0x213   : > { %432 = vmin.xlane.f32.xlu1 %v431_v9 }
 0x217   : > { %460 = vmin.xlane.f32.xlu1 %v459_v11  ;;  %v773_v11 = vsel %vm568_vm0, 1.0, %v840_v60 }
 0x229   : > { %v486_v12 = vpop.xlane.xlu0 %485 }
 0x22d   : > { %v484_v13 = vpop.xlane.xlu1 %483  ;;  %v537_v16 = vpop.xlane.xlu0 %536 }
 0x22e   : > { %823 = vlog2.f32 %v484_v13 }
 0x22f   : > { %825 = vlog2.f32 %v486_v12 }
 0x231   : > { %v488_v17 = vpop.xlane.xlu1 %487  ;;  %v525_v18 = vpop.xlane.xlu0 %524 }
 0x232   : > { %827 = vlog2.f32 %v488_v17 }
 0x235   : > { %v490_v21 = vpop.xlane.xlu1 %489 }
 0x236   : > { %829 = vlog2.f32 %v490_v21 }
 0x23b   : > { %v824_v25 = vpop.eup %823 }
 0x23c   : > { %v492_v27 = vmul.f32 0.6931472, %v824_v25  ;;  %v826_v28 = vpop.eup %825 }
 0x23d   : > { %v494_v33 = vmul.f32 0.6931472, %v826_v28 }
 0x23e   : > { %v544_v30 = vmul.f32 7.0, %v492_v27 }
 0x23f   : > { %v828_v31 = vpop.eup %827  ;;  %v545_v42 = vmul.f32 7.0, %v494_v33 }
 0x240   : > { %v548_v35 = vsub.f32 %v537_v16, %v544_v30  ;;  %v496_v37 = vmul.f32 0.6931472, %v828_v31 }
 0x242   : > { %v556_v44 = vmul.f32 0.014285714, %v548_v35  ;;  %v530_v48 = vsub.f32 %v525_v18, %v496_v37  ;;  %v546_v52 = vmul.f32 7.0, %v496_v37  ;;  %v775_v18 = vsel %vm570_vm1, 1.0, %v840_v60 }
 0x243   : > { %v830_v36 = vpop.eup %829 }
 0x244   : > { %v498_v45 = vmul.f32 0.6931472, %v830_v36  ;;  %v554_v63 = vmul.f32 0.9, %v530_v48 }
 0x246   : > { %v547_v57 = vmul.f32 7.0, %v498_v45 }
 0x27c   : > { %v447_v19 = vpop.xlane.xlu0 %446 }
 0x27d   : > { %v448_v53 = vcvt.f32.s32 %v447_v19  ;;  %v436_v19 = vshll.u32 %v435_v5, 16 }
 0x27f   : > { %v451_v6 = vadd.s32 %v450_v62, %v448_v53 }
 0x280   : > { %v419_v22 = vpop.xlane.xlu0 %418 }
 0x281   : > { %v420_v24 = vcvt.f32.s32 %v419_v22  ;;  %vm605_vm4 = vcmp.eq.s32.totalorder %v451_v6, %v915_v15  ;;  %469 = vst.msk [vmem:[%s974_s16 + $0x10] sm:$0xff] %vm466_vm14, %v451_v6 }
 0x282   : > { %v779_v15 = vsel %vm605_vm4, 1.0, %v840_v60 }
 0x283   : > { %v976_v26 = vadd.s32 %v422_v23, %v420_v24 }
 0x284   : > { %v543_v54 = vpop.xlane.xlu0 %542 }
 0x285   : > { %467 = vst.msk [vmem:[%s974_s16] sm:$0xff] %vm466_vm14, %v976_v26  ;;  %v551_v1 = vsub.f32 %v543_v54, %v547_v57  ;;  %vm603_vm3 = vcmp.eq.s32.totalorder %v976_v26, %v945_v41  ;;  %v776_v41 = vsel %vm571_vm2, 1.0, %v840_v60 }
 0x286   : > { %v777_v25 = vsel %vm603_vm3, 1.0, %v840_v60 }
 0x287   : > { %v559_v12 = vmul.f32 0.014285714, %v551_v1 }
 0x288   : > { %v521_v29 = vpop.xlane.xlu1 %520 }
 0x289   : > { %v528_v32 = vsub.f32 %v521_v29, %v492_v27  ;;  %v464_v29 = vshll.u32 %v463_v3, 16 }
 0x28b   : > { %v552_v38 = vmul.f32 0.9, %v528_v32  ;;  %v615_v32 = vmul.f32 %v777_v25, %v773_v11 }
 0x28c   : > { %v523_v34 = vpop.xlane.xlu1 %522 }
 0x28d   : > { %v529_v39 = vsub.f32 %v523_v34, %v494_v33  ;;  %v560_v49 = vadd.f32 %v556_v44, %v552_v38  ;;  %v619_v44 = vsel %vm466_vm14, %v615_v32, 0.0 }
 0x28f   : > { %v553_v50 = vmul.f32 0.9, %v529_v39  ;;  %v564_v2 = vsub.f32 0.0, %v560_v49 }
 0x290   : > { %v539_v43 = vpop.xlane.xlu1 %538 }
 0x291   : > { %v549_v46 = vsub.f32 %v539_v43, %v545_v42  ;;  %v580_v13 = vmul.f32 %v773_v11, %v564_v2  ;;  %v617_v42 = vmul.f32 %v779_v15, %v775_v18 }
 0x293   : > { %v557_v51 = vmul.f32 0.014285714, %v549_v46  ;;  %v584_v28 = vsel %vm466_vm14, %v580_v13, 0.0  ;;  %v622_v48 = vsel %vm466_vm14, %v617_v42, 0.0 }
 0x294   : > { %v541_v55 = vpop.xlane.xlu1 %540 }
 0x295   : > { %v561_v58 = vadd.f32 %v557_v51, %v553_v50  ;;  %v550_v59 = vsub.f32 %v541_v55, %v546_v52 }
 0x297   : > { %v565_v56 = vsub.f32 0.0, %v561_v58  ;;  %v558_v4 = vmul.f32 0.014285714, %v550_v59 }
 0x298   : > { %v527_v7 = vpop.xlane.xlu1 %526 }
 0x299   : > { %v581_v8 = vmul.f32 %v774_v61, %v565_v56  ;;  %v562_v9 = vadd.f32 %v558_v4, %v554_v63  ;;  %v531_v10 = vsub.f32 %v527_v7, %v498_v45 }
 0x29b   : > { %v566_v16 = vsub.f32 0.0, %v562_v9  ;;  %v555_v17 = vmul.f32 0.9, %v531_v10  ;;  %v585_v24 = vsel %vm466_vm14, %v581_v8, 0.0 }
 0x29c   : > { %v433_v20 = vpop.xlane.xlu1 %432  ;;  %v586_v31 = vadd.f32 %v585_v24, %v584_v28 }
 0x29d   : > { %v582_v21 = vmul.f32 %v775_v18, %v566_v16  ;;  %v563_v22 = vadd.f32 %v559_v12, %v555_v17  ;;  %v434_v23 = vcvt.f32.s32 %v433_v20 }
 0x29f   : > { %v567_v26 = vsub.f32 0.0, %v563_v22  ;;  %v437_v27 = vadd.s32 %v436_v19, %v434_v23  ;;  %v587_v0 = vsel %vm466_vm14, %v582_v21, 0.0 }
 0x2a0   : > { %v461_v30 = vpop.xlane.xlu1 %460  ;;  %v588_v36 = vadd.f32 %v587_v0, %v586_v31 }
 0x2a1   : > { %468 = vst.msk [vmem:[%s974_s16 + $0x8] sm:$0xff] %vm466_vm14, %v437_v27  ;;  %vm604_vm5 = vcmp.eq.s32.totalorder %v437_v27, %v911_v14  ;;  %v462_v33 = vcvt.f32.s32 %v461_v30  ;;  %v583_v34 = vmul.f32 %v776_v41, %v567_v26 }
 0x2a2   : > { %v778_v35 = vsel %vm604_vm5, 1.0, %v840_v60 }
 0x2a3   : > { %v616_v37 = vmul.f32 %v778_v35, %v774_v61  ;;  %v465_v38 = vadd.s32 %v464_v29, %v462_v33  ;;  %v589_v39 = vsel %vm466_vm14, %v583_v34, 0.0 }
 0x2a4   : > { %v590_v43 = vadd.f32 %v589_v39, %v588_v36 }
 0x2a5   : > { %470 = vst.msk [vmem:[%s974_s16 + $0x18] sm:$0xff] %vm466_vm14, %v465_v38  ;;  %vm606_vm6 = vcmp.eq.s32.totalorder %v465_v38, %v942_v40  ;;  %v620_v14 = vsel %vm466_vm14, %v616_v37, 0.0 }
 0x2a6   : > { %591 = vadd.xlane.f32.xlu0 %v590_v43  ;;  %v780_v45 = vsel %vm606_vm6, 1.0, %v840_v60  ;;  %v621_v46 = vadd.f32 %v620_v14, %v619_v44 }
 0x2a7   : > { %v618_v47 = vmul.f32 %v780_v45, %v776_v41 }
 0x2a8   : > { %v623_v49 = vadd.f32 %v622_v48, %v621_v46 }
 0x2a9   : > { %v624_v50 = vsel %vm466_vm14, %v618_v47, 0.0 }
 0x2aa   : > { %v625_v51 = vadd.f32 %v624_v50, %v623_v49 }
 0x2ac   : > { %626 = vadd.xlane.f32.xlu1 %v625_v51 }
 0x32f   : > { %v592_v52 = vpop.xlane.xlu0 %591 }
 0x330   : > { %v593_v53 = vrot.slane %v592_v52, 4 }
 0x332   : > { %v594_v40 = vadd.f32 %v593_v53, %v592_v52 }
 0x334   : > { %v595_v54 = vrot.slane %v594_v40, 2 }
 0x335   : > { %v627_v55 = vpop.xlane.xlu1 %626 }
 0x336   : > { %v628_v57 = vrot.slane %v627_v55, 4  ;;  %v596_v58 = vadd.f32 %v595_v54, %v594_v40 }
 0x338   : > { %v629_v59 = vadd.f32 %v628_v57, %v627_v55  ;;  %v597_v60 = vrot.slane %v596_v58, 1 }
 0x33a   : > { %v630_v61 = vrot.slane %v629_v59, 2  ;;  %v598_v62 = vadd.f32 %v597_v60, %v596_v58 }
 0x33c   : > { %v631_v63 = vadd.f32 %v630_v61, %v629_v59  ;;  %795 = vpush %v598_v62 }
 0x33e   : > { %v632_v1 = vrot.slane %v631_v63, 1 }
 0x340   : > { %v633_v2 = vadd.f32 %v632_v1, %v631_v63 }
 0x342   : > { %797 = vpush %v633_v2 }
 0x36d   : > { %s796_s20 = spop %795 }
 0x36e   : > { %v600_v56 = vstv %s796_s20 }
 0x36f   : > { %602 = vst.msk [vmem:[%s284_s19] sm:$0x1] %vm601_vm7, %v600_v56 }
 0x373   : > { %s798_s26 = spop %797 }
 0x374   : > { %v635_v4 = vstv %s798_s26 }
 0x375   : > { %636 = vst.msk [vmem:[%s287_s25] sm:$0x1] %vm601_vm7, %v635_v4 }
 0x376 PF: > { %s17_s21 = sadd.s32 1, %s837_s21  }
 0x377   : > { %p14_p5 = scmp.ge.s32.totalorder %s17_s21, 4  }
 0x379   :  { %16 = sbr.rel (!%p14_p5) target bundleno = 1 (0x1), region = 93 }

</bundles_post_ra>
